<compile_context>
chip_gen: v7x
topology: tpu7x:2x2x1
jax: 0.10.0
libtpu: 0.0.40
codegen_flags: <defaults>
</compile_context>

<pallas_src>
import numpy as np
import jax
import jax.numpy as jnp
from jax.experimental import pallas as pl
from jax.experimental.pallas import tpu as pltpu


# --------------------------------------------------------------------------------------
# Kernel 1: GATConv(5 -> 16) + ReLU  ->  x_gat (N, 16).  Graph-global reduction: no grid.
# --------------------------------------------------------------------------------------
def gat_kernel(x_ref, et_ref, ea_ref, wg_ref, we_ref, xg_ref):
    N = x_ref.shape[0]
    E = et_ref.shape[0]

    x = x_ref[...]                                    # (N, 5)
    src = et_ref[:, 0:1]                              # (E, 1) int32
    dst = et_ref[:, 1:2]                              # (E, 1) int32

    # one-hot src/dst built in-register (no HBM one-hot traffic)
    node_ids = jax.lax.broadcasted_iota(jnp.int32, (E, N), 1)
    S = (node_ids == src).astype(jnp.float32)         # (E, N)
    D = (node_ids == dst).astype(jnp.float32)         # (E, N)

    # folded node weights: cols 0:16 = lin(x), col 16 = a_src, col 17 = a_dst; row 5 = bias
    wg = wg_ref[...]                                  # (6, 18)
    xp_ext = jnp.dot(x, wg[0:5, :], preferred_element_type=jnp.float32)    # (N, 18)
    bg = wg[5:6, 0:16]                                # (1, 16)

    # folded edge weights: col 16 = a_edge
    ep_ext = jnp.dot(ea_ref[...], we_ref[...], preferred_element_type=jnp.float32)  # (E, 17)
    a_edge = ep_ext[:, 16:17]                         # (E, 1)

    # fused src-side gather: x'[src] and a_src[src] in one MXU pass
    xs_ext = jnp.dot(S, xp_ext, preferred_element_type=jnp.float32)        # (E, 18)
    x_src_p = xs_ext[:, 0:16]                         # (E, 16)
    a_src_e = xs_ext[:, 16:17]                        # (E, 1)
    # dst-side gather: only the a_dst column is needed (extra lanes ride the same pass)
    xd_ext = jnp.dot(D, xp_ext, preferred_element_type=jnp.float32)        # (E, 18)
    a_dst_e = xd_ext[:, 17:18]                        # (E, 1)

    a_e = a_src_e + a_dst_e + a_edge                  # (E, 1) per-edge logit
    a_e = jnp.where(a_e > 0, a_e, 0.2 * a_e)          # leaky_relu(0.2)

    # segment softmax over dst: sums/gathers on the MXU; only the max needs an (E,N) temp.
    masked = jnp.where(D > 0.5, a_e, jnp.float32(-1e9))                    # (E, N)
    m_node = jnp.max(masked, axis=0, keepdims=True)                        # (1, N) per-dst max
    m_edge = jax.lax.dot_general(D, m_node, (((1,), (1,)), ((), ())),      # D @ m_node^T
                                 preferred_element_type=jnp.float32)       # (E, 1)
    exp_a = jnp.exp(a_e - m_edge)                                          # (E, 1)
    s_node = jax.lax.dot_general(D, exp_a, (((0,), (0,)), ((), ())),       # D^T @ exp_a
                                 preferred_element_type=jnp.float32)       # (N, 1)
    denom = jnp.dot(D, s_node, preferred_element_type=jnp.float32) + 1e-16 # (E, 1)
    alpha = exp_a * pl.reciprocal(denom, approx=True)                      # divide -> EUP

    # message = alpha * x'[src]; scatter-sum onto dst (MXU); bias; relu
    msg = alpha * x_src_p                                                  # (E, 16)
    out_nodes = jax.lax.dot_general(D, msg, (((0,), (0,)), ((), ())),      # D^T @ msg
                                    preferred_element_type=jnp.float32)    # (N, 16)
    xg_ref[...] = jnp.maximum(out_nodes + bg, 0.0)


# --------------------------------------------------------------------------------------
# Kernel 2: edge MLP  lin1(34->64)+relu+lin2(64->2)+sigmoid, tiled over the edge axis.
# --------------------------------------------------------------------------------------
def edge_mlp_kernel(et_ref, ea_ref, xg_ref, wmlp_ref, wout_ref, out_ref):
    TE = et_ref.shape[0]
    N = xg_ref.shape[0]

    src = et_ref[:, 0:1]                              # (TE, 1)
    dst = et_ref[:, 1:2]                              # (TE, 1)
    node_ids = jax.lax.broadcasted_iota(jnp.int32, (TE, N), 1)
    S = (node_ids == src).astype(jnp.float32)         # (TE, N)
    D = (node_ids == dst).astype(jnp.float32)         # (TE, N)

    xg = xg_ref[...]                                  # (N, 16)
    xs = jnp.dot(S, xg, preferred_element_type=jnp.float32)    # (TE, 16)  x_gat[src]
    xd = jnp.dot(D, xg, preferred_element_type=jnp.float32)    # (TE, 16)  x_gat[dst]

    # packed lin1 weights: rows [0:16]=W1a, [16:18]=W1b, [18:34]=W1c, [34:35]=b1
    wmlp = wmlp_ref[...]                              # (35, 64)
    h = (jnp.dot(xs, wmlp[0:16, :], preferred_element_type=jnp.float32)
         + jnp.dot(ea_ref[...], wmlp[16:18, :], preferred_element_type=jnp.float32)
         + jnp.dot(xd, wmlp[18:34, :], preferred_element_type=jnp.float32)
         + wmlp[34:35, :])                            # (TE, 64)
    h = jnp.maximum(h, 0.0)

    # packed lin2: rows 0:64 = W2 (lanes 0:2, rest zero-padded), row 64 = b2.
    wout = wout_ref[...]                              # (65, 128)
    logits = jnp.dot(h, wout[0:64, :], preferred_element_type=jnp.float32) + wout[64:65, :]
    out_ref[...] = jax.nn.sigmoid(logits)             # (TE, 128) lane-dense unmasked store


# --------------------------------------------------------------------------------------
# Host-side parameter packing (folds attention vectors, packs tiny operands).
# --------------------------------------------------------------------------------------
def _pack_params(params):
    Wg = params["Wg"]
    Wg_ext = jnp.concatenate(
        [Wg, Wg @ params["att_src"].T, Wg @ params["att_dst"].T], axis=1)       # (5, 18)
    bg_row = jnp.pad(params["bg"], ((0, 0), (0, 2)))                            # (1, 18)
    Wg_pack = jnp.concatenate([Wg_ext, bg_row], axis=0)                         # (6, 18)

    We = params["We"]
    We_ext = jnp.concatenate([We, We @ params["att_edge"].T], axis=1)           # (2, 17)

    Wmlp = jnp.concatenate(
        [params["W1a"], params["W1b"], params["W1c"], params["b1"]], axis=0)    # (35, 64)

    Wout = jnp.zeros((65, 128), jnp.float32)
    Wout = Wout.at[0:64, 0:2].set(params["W2"])
    Wout = Wout.at[64:65, 0:2].set(params["b2"])                                # (65, 128)
    return Wg_pack, We_ext, Wmlp, Wout


def edge_conv_forward(x, edges, edge_attr, detector_labels, params):
    """Pallas implementation of EdgeConv.forward. Returns (probs for all edges, keep mask)."""
    N = x.shape[0]
    E = edges.shape[1]
    Wg_pack, We_ext, Wmlp, Wout = _pack_params(params)
    edges_t = edges.T.astype(jnp.int32)               # (E, 2): col 0 = src, col 1 = dst

    vmem = pl.BlockSpec(memory_space=pltpu.MemorySpace.VMEM)

    # --- call 1: GAT + relu -> x_gat (N, 16) ---
    x_gat = pl.pallas_call(
        gat_kernel,
        out_shape=jax.ShapeDtypeStruct((N, 16), jnp.float32),
        in_specs=[vmem] * 5,
        out_specs=vmem,
    )(x, edges_t, edge_attr, Wg_pack, We_ext)

    # --- call 2: edge MLP, tiled over edges, parallel across TensorCores ---
    TE = 32 if (E % 32 == 0) else E                   # TE=E (full block) is always legal
    probs_pad = pl.pallas_call(
        edge_mlp_kernel,
        out_shape=jax.ShapeDtypeStruct((E, 128), jnp.float32),
        grid=(E // TE,),
        in_specs=[
            pl.BlockSpec((TE, 2), lambda i: (i, 0)),       # edges_t tile
            pl.BlockSpec((TE, 2), lambda i: (i, 0)),       # edge_attr tile
            pl.BlockSpec((N, 16), lambda i: (0, 0)),       # x_gat (resident every step)
            pl.BlockSpec((35, 64), lambda i: (0, 0)),      # packed lin1
            pl.BlockSpec((65, 128), lambda i: (0, 0)),     # packed lin2 (lane-padded)
        ],
        out_specs=pl.BlockSpec((TE, 128), lambda i: (i, 0)),
        compiler_params=pltpu.CompilerParams(
            dimension_semantics=("parallel",)),
    )(edges_t, edge_attr, x_gat, Wmlp, Wout)

    probs = probs_pad[:, :2]                          # drop lane padding

    # SplitSyndromes: keep edges whose BOTH endpoints are detector nodes.
    # TODO(synk): dynamic-shape boolean filtering has no Pallas equivalent; the mask is
    # computed in JAX and the gather is done host-side on concrete arrays.
    valid = detector_labels[edges[0]] & detector_labels[edges[1]]      # (E,)
    return probs, valid


def reference_forward(x, edges, edge_attr, params, N):
    """Pure-JAX reference (segment ops) mirroring PyG GATConv + the edge MLP."""
    src, dst = edges[0], edges[1]
    xp = x @ params["Wg"]
    a_src = (xp * params["att_src"]).sum(-1)
    a_dst = (xp * params["att_dst"]).sum(-1)
    ep = edge_attr @ params["We"]
    a_edge = (ep * params["att_edge"]).sum(-1)
    a = a_src[src] + a_dst[dst] + a_edge
    a = jnp.where(a > 0, a, 0.2 * a)
    m = jax.ops.segment_max(a, dst, num_segments=N)
    m = jnp.where(jnp.isfinite(m), m, 0.0)
    ex = jnp.exp(a - m[dst])
    s = jax.ops.segment_sum(ex, dst, num_segments=N) + 1e-16
    alpha = ex / s[dst]
    msg = alpha[:, None] * xp[src]
    out = jax.ops.segment_sum(msg, dst, num_segments=N) + params["bg"]
    xg = jnp.maximum(out, 0.0)
    ef = jnp.concatenate([xg[src], edge_attr, xg[dst]], axis=-1)
    W1 = jnp.concatenate([params["W1a"], params["W1b"], params["W1c"]], axis=0)
    h = jnp.maximum(ef @ W1 + params["b1"], 0.0)
    logits = h @ params["W2"] + params["b2"]
    return jax.nn.sigmoid(logits)


if __name__ == "__main__":
    key = jax.random.PRNGKey(0)
    ks = jax.random.split(key, 16)

    N = 16          # nodes (node feature dim = 5, as GATConv(5, 16))
    E_half = 32     # undirected edges -> E = 64 directed edges
    E = 2 * E_half

    # ---- deterministic synthetic graph inputs ----
    x = jax.random.normal(ks[0], (N, 5), dtype=jnp.float32)
    src = jax.random.randint(ks[1], (E_half,), 0, N)
    off = jax.random.randint(ks[2], (E_half,), 1, N)
    dst = (src + off) % N
    edges = jnp.stack([jnp.concatenate([src, dst]),
                       jnp.concatenate([dst, src])]).astype(jnp.int32)   # (2, E)
    ea_half = jax.random.normal(ks[3], (E_half, 2), dtype=jnp.float32)
    edge_attr = jnp.concatenate([ea_half, ea_half], axis=0)              # (E, 2)
    detector_labels = jnp.arange(N) < 12                                 # (N,) bool

    # ---- deterministic parameters (shapes from the module __init__) ----
    sc = 0.2
    params = {
        # GATConv(5, 16, heads=1, concat=False, edge_dim=2)
        "Wg":       sc * jax.random.normal(ks[4],  (5, 16),  dtype=jnp.float32),   # lin.weight^T
        "We":       sc * jax.random.normal(ks[5],  (2, 16),  dtype=jnp.float32),   # lin_edge.weight^T
        "att_src":  sc * jax.random.normal(ks[6],  (1, 16),  dtype=jnp.float32),
        "att_dst":  sc * jax.random.normal(ks[7],  (1, 16),  dtype=jnp.float32),
        "att_edge": sc * jax.random.normal(ks[8],  (1, 16),  dtype=jnp.float32),
        "bg":       sc * jax.random.normal(ks[9],  (1, 16),  dtype=jnp.float32),   # GAT bias
        # lin1: Linear(34, 64) with weight^T split as [x_src(16) | edge_attr(2) | x_dst(16)]
        "W1a":      sc * jax.random.normal(ks[10], (16, 64), dtype=jnp.float32),
        "W1b":      sc * jax.random.normal(ks[11], (2, 64),  dtype=jnp.float32),
        "W1c":      sc * jax.random.normal(ks[12], (16, 64), dtype=jnp.float32),
        "b1":       sc * jax.random.normal(ks[13], (1, 64),  dtype=jnp.float32),
        # lin2: Linear(64, 2)
        "W2":       sc * jax.random.normal(ks[14], (64, 2),  dtype=jnp.float32),
        "b2":       sc * jax.random.normal(ks[15], (1, 2),   dtype=jnp.float32),
    }

    probs, valid = edge_conv_forward(x, edges, edge_attr, detector_labels, params)
    probs = jax.block_until_ready(probs)
    valid = jax.block_until_ready(valid)

    # correctness check against a pure-JAX reference of the same math.
    # Tolerance accounts for pl.reciprocal(approx=True) on the softmax denominator.
    ref = jax.block_until_ready(reference_forward(x, edges, edge_attr, params, N))
    np.testing.assert_allclose(np.asarray(probs), np.asarray(ref), rtol=5e-3, atol=5e-3)

    # SplitSyndromes gather (data-dependent shape) done host-side on concrete arrays
    mask = np.asarray(valid)
    edges_out = np.asarray(edges)[:, mask]          # (2, E_valid)
    edge_feat_out = np.asarray(probs)[mask, :]      # (E_valid, 2)
    assert edges_out.shape[1] == edge_feat_out.shape[0]

    print("KERNEL_OK")
</pallas_src>

<mosaic_0001>
module attributes {stable_mosaic.version = 11 : i64} {
  func.func @gat_kernel(%arg0: memref<16x5xf32, #tpu.memory_space<vmem>>, %arg1: memref<64x2xi32, #tpu.memory_space<vmem>>, %arg2: memref<64x2xf32, #tpu.memory_space<vmem>>, %arg3: memref<6x18xf32, #tpu.memory_space<vmem>>, %arg4: memref<2x17xf32, #tpu.memory_space<vmem>>, %arg5: memref<16x16xf32, #tpu.memory_space<vmem>>) attributes {dimension_semantics = [], scalar_prefetch = 0 : i64, scratch_operands = 0 : i64, tpu.core_type = #tpu.core_type<tc>} {
    %c0 = arith.constant 0 : index
    %c0_0 = arith.constant 0 : index
    %0 = vector.load %arg0[%c0, %c0_0] : memref<16x5xf32, #tpu.memory_space<vmem>>, vector<16x5xf32>
    %c0_1 = arith.constant 0 : index
    %c0_2 = arith.constant 0 : index
    %1 = vector.load %arg1[%c0_1, %c0_2] : memref<64x2xi32, #tpu.memory_space<vmem>>, vector<64x1xi32>
    %c0_3 = arith.constant 0 : index
    %c1 = arith.constant 1 : index
    %2 = vector.load %arg1[%c0_3, %c1] : memref<64x2xi32, #tpu.memory_space<vmem>>, vector<64x1xi32>
    %3 = tpu.iota {dimensions = array<i32: 1>} : vector<64x16xi32>
    %4 = vector.broadcast %1 : vector<64x1xi32> to vector<64x16xi32>
    %5 = arith.cmpi eq, %3, %4 : vector<64x16xi32>
    %6 = arith.extui %5 : vector<64x16xi1> to vector<64x16xi32>
    %7 = arith.sitofp %6 : vector<64x16xi32> to vector<64x16xf32>
    %8 = vector.broadcast %2 : vector<64x1xi32> to vector<64x16xi32>
    %9 = arith.cmpi eq, %3, %8 : vector<64x16xi32>
    %10 = arith.extui %9 : vector<64x16xi1> to vector<64x16xi32>
    %11 = arith.sitofp %10 : vector<64x16xi32> to vector<64x16xf32>
    %c0_4 = arith.constant 0 : index
    %c0_5 = arith.constant 0 : index
    %12 = vector.load %arg3[%c0_4, %c0_5] : memref<6x18xf32, #tpu.memory_space<vmem>>, vector<6x18xf32>
    %13 = vector.extract_strided_slice %12 {offsets = [0, 0], sizes = [5, 18], strides = [1, 1]} : vector<6x18xf32> to vector<5x18xf32>
    %cst = arith.constant dense<0.000000e+00> : vector<16x18xf32>
    %14 = tpu.matmul %0, %13, %cst {dimension_numbers = #tpu.dot_dimension_numbers<[1], [0], [0], [1], [0, 0, 1, 1], [], []>} : vector<16x5xf32>, vector<5x18xf32>, vector<16x18xf32> -> vector<16x18xf32>
    %15 = vector.extract_strided_slice %12 {offsets = [5, 0], sizes = [1, 16], strides = [1, 1]} : vector<6x18xf32> to vector<1x16xf32>
    %c0_6 = arith.constant 0 : index
    %c0_7 = arith.constant 0 : index
    %16 = vector.load %arg2[%c0_6, %c0_7] : memref<64x2xf32, #tpu.memory_space<vmem>>, vector<64x2xf32>
    %c0_8 = arith.constant 0 : index
    %c0_9 = arith.constant 0 : index
    %17 = vector.load %arg4[%c0_8, %c0_9] : memref<2x17xf32, #tpu.memory_space<vmem>>, vector<2x17xf32>
    %cst_10 = arith.constant dense<0.000000e+00> : vector<64x17xf32>
    %18 = tpu.matmul %16, %17, %cst_10 {dimension_numbers = #tpu.dot_dimension_numbers<[1], [0], [0], [1], [0, 0, 1, 1], [], []>} : vector<64x2xf32>, vector<2x17xf32>, vector<64x17xf32> -> vector<64x17xf32>
    %19 = vector.extract_strided_slice %18 {offsets = [0, 16], sizes = [64, 1], strides = [1, 1]} : vector<64x17xf32> to vector<64x1xf32>
    %cst_11 = arith.constant dense<0.000000e+00> : vector<64x18xf32>
    %20 = tpu.matmul %7, %14, %cst_11 {dimension_numbers = #tpu.dot_dimension_numbers<[1], [0], [0], [1], [0, 0, 1, 1], [], []>} : vector<64x16xf32>, vector<16x18xf32>, vector<64x18xf32> -> vector<64x18xf32>
    %21 = vector.extract_strided_slice %20 {offsets = [0, 0], sizes = [64, 16], strides = [1, 1]} : vector<64x18xf32> to vector<64x16xf32>
    %22 = vector.extract_strided_slice %20 {offsets = [0, 16], sizes = [64, 1], strides = [1, 1]} : vector<64x18xf32> to vector<64x1xf32>
    %cst_12 = arith.constant dense<0.000000e+00> : vector<64x18xf32>
    %23 = tpu.matmul %11, %14, %cst_12 {dimension_numbers = #tpu.dot_dimension_numbers<[1], [0], [0], [1], [0, 0, 1, 1], [], []>} : vector<64x16xf32>, vector<16x18xf32>, vector<64x18xf32> -> vector<64x18xf32>
    %24 = vector.extract_strided_slice %23 {offsets = [0, 17], sizes = [64, 1], strides = [1, 1]} : vector<64x18xf32> to vector<64x1xf32>
    %25 = arith.addf %22, %24 : vector<64x1xf32>
    %26 = arith.addf %25, %19 : vector<64x1xf32>
    %cst_13 = arith.constant 0.000000e+00 : f32
    %27 = vector.broadcast %cst_13 : f32 to vector<64x1xf32>
    %28 = arith.cmpf ogt, %26, %27 : vector<64x1xf32>
    %cst_14 = arith.constant 2.000000e-01 : f32
    %29 = vector.broadcast %cst_14 : f32 to vector<64x1xf32>
    %30 = arith.mulf %29, %26 : vector<64x1xf32>
    %31 = arith.select %28, %26, %30 : vector<64x1xi1>, vector<64x1xf32>
    %cst_15 = arith.constant 5.000000e-01 : f32
    %32 = vector.broadcast %cst_15 : f32 to vector<64x16xf32>
    %33 = arith.cmpf ogt, %11, %32 : vector<64x16xf32>
    %cst_16 = arith.constant -1.000000e+09 : f32
    %34 = vector.shape_cast %31 : vector<64x1xf32> to vector<64x1xf32>
    %35 = vector.broadcast %34 : vector<64x1xf32> to vector<64x16xf32>
    %36 = vector.broadcast %cst_16 : f32 to vector<64x16xf32>
    %37 = arith.select %33, %35, %36 : vector<64x16xi1>, vector<64x16xf32>
    %cst_17 = arith.constant dense<0xFF800000> : vector<16xf32>
    %38 = vector.multi_reduction <maximumf>, %37, %cst_17 [0] : vector<64x16xf32> to vector<16xf32>
    %39 = vector.shape_cast %38 : vector<16xf32> to vector<1x16xf32>
    %cst_18 = arith.constant dense<0.000000e+00> : vector<64x1xf32>
    %40 = tpu.matmul %11, %39, %cst_18 {dimension_numbers = #tpu.dot_dimension_numbers<[1], [1], [0], [0], [0, 0, 1, 0], [], []>} : vector<64x16xf32>, vector<1x16xf32>, vector<64x1xf32> -> vector<64x1xf32>
    %41 = arith.subf %31, %40 : vector<64x1xf32>
    %42 = math.exp %41 : vector<64x1xf32>
    %cst_19 = arith.constant dense<0.000000e+00> : vector<16x1xf32>
    %43 = tpu.matmul %11, %42, %cst_19 {dimension_numbers = #tpu.dot_dimension_numbers<[0], [0], [1], [1], [0, 1, 1, 1], [], []>} : vector<64x16xf32>, vector<64x1xf32>, vector<16x1xf32> -> vector<16x1xf32>
    %cst_20 = arith.constant dense<0.000000e+00> : vector<64x1xf32>
    %44 = tpu.matmul %11, %43, %cst_20 {dimension_numbers = #tpu.dot_dimension_numbers<[1], [0], [0], [1], [0, 0, 1, 1], [], []>} : vector<64x16xf32>, vector<16x1xf32>, vector<64x1xf32> -> vector<64x1xf32>
    %cst_21 = arith.constant 1.000000e-16 : f32
    %45 = vector.broadcast %cst_21 : f32 to vector<64x1xf32>
    %46 = arith.addf %44, %45 : vector<64x1xf32>
    %47 = tpu.reciprocal %46 {approx = true} : vector<64x1xf32> -> vector<64x1xf32>
    %48 = arith.mulf %42, %47 : vector<64x1xf32>
    %49 = vector.broadcast %48 : vector<64x1xf32> to vector<64x16xf32>
    %50 = arith.mulf %49, %21 : vector<64x16xf32>
    %cst_22 = arith.constant dense<0.000000e+00> : vector<16x16xf32>
    %51 = tpu.matmul %11, %50, %cst_22 {dimension_numbers = #tpu.dot_dimension_numbers<[0], [0], [1], [1], [0, 1, 1, 1], [], []>} : vector<64x16xf32>, vector<64x16xf32>, vector<16x16xf32> -> vector<16x16xf32>
    %52 = vector.broadcast %15 : vector<1x16xf32> to vector<16x16xf32>
    %53 = arith.addf %51, %52 : vector<16x16xf32>
    %cst_23 = arith.constant 0.000000e+00 : f32
    %54 = vector.broadcast %cst_23 : f32 to vector<16x16xf32>
    %55 = arith.maximumf %53, %54 : vector<16x16xf32>
    %c0_24 = arith.constant 0 : index
    %c0_25 = arith.constant 0 : index
    %56 = vector.load %arg5[%c0_24, %c0_25] : memref<16x16xf32, #tpu.memory_space<vmem>>, vector<16x16xf32>
    tpu.vector_store %arg5[%c0_24, %c0_25], %55 {strides = array<i32>} : memref<16x16xf32, #tpu.memory_space<vmem>>, vector<16x16xf32>,
    return
  }
}

</mosaic_0001>

<bundles_post_ra>
// kernel: tpu_custom_call.1
= control target key start
LH: loop header
LB: loop body
LE: loop exit
PB: predicated region body
PF: predicated region fallthrough
CT: control target
= control target key end

     0   :  { %vm137_vm0 = vcmask 1044480   ;;  %vm130_vm1 = vcmask 39936   ;;  %vm250_vm2 = vcmask 1041408   ;;  %v1628_v4 = vmov 1   ;;  %s1963_s0 = inlined_call_operand.vmem [shape: f32[16,5], index: 0, kind: input, shape index: {}]   ;;  %s1964_s1 = inlined_call_operand.vmem [shape: s32[64,2], index: 1, kind: input, shape index: {}]   ;;  %s1965_s2 = inlined_call_operand.vmem [shape: f32[64,2], index: 2, kind: input, shape index: {}]   ;;  %s1966_s3 = inlined_call_operand.vmem [shape: f32[6,18], index: 3, kind: input, shape index: {}]   ;;  %s1967_s4 = inlined_call_operand.vmem [shape: f32[2,17], index: 4, kind: input, shape index: {}]   ;;  %s1968_s5 = inlined_call_operand.hbm [shape: f32[16,16], index: 5, kind: output, shape index: {}]  }
   0x1   :  { %v1671_v0 = vld [vmem:[%s1966_s3] sm:$0x3f]  ;;  %v22_v2 = vld [vmem:[%s1963_s0 + $0x8] sm:$0xff]  ;;  %1546 = vset.pattern.permute.xlu0 %v1628_v4  ;;  %v25_v5 = vld [vmem:[%s1964_s1 + $0x10] sm:$0xff]  ;;  %vm225_vm3 = vcmask 15360   ;;  %1547 = vset.pattern.permute.xlu1 %v1628_v4 }
   0x2   :  { %v21_v1 = vld [vmem:[%s1963_s0] sm:$0xff]  ;;  %1387 = vmatprep.subr.msk.mxu0 %vm137_vm0, %v1671_v0  ;;  %v24_v7 = vld [vmem:[%s1964_s1 + $0x8] sm:$0xff]  ;;  %88 = vperm.xlu1 %1547, %v25_v5   ;;  %v218_v10 = vld [vmem:[%s1965_s2 + $0x10] sm:$0xff] }
   0x3   :  { %1389 = vmatprep.mubr.msk.f32.mxu0 %vm130_vm1, %v21_v1  ;;  %v23_v3 = vld [vmem:[%s1964_s1] sm:$0xff]  ;;  %1388 = vmatpush3.msk.msra.mxu0 %vm137_vm0, %v1671_v0  ;;  %v217_v9 = vld [vmem:[%s1965_s2 + $0x8] sm:$0xff] }
   0x4   :  { %1390 = vmatmul.mubr.msk.f32.vlgmr.msra.gmra.mrb[0].mxu0 %vm130_vm1, %v22_v2  ;;  %82 = vperm.xlu0 %1546, %v23_v3   ;;  %v224_v6 = vld [vmem:[%s1967_s4] sm:$0x3] }
   0x5   :  { %1392 = vmatprep.subr.msk.mxu1 %vm250_vm2, %v224_v6  ;;  %v216_v8 = vld [vmem:[%s1965_s2] sm:$0xff] }
   0x6   :  { %1393 = vmatpush3.msk.msra.mxu1 %vm250_vm2, %v224_v6 }
   0x7   :  { %10 = vsyncpa [#allocation3], 0  ;;  %v26_v11 = vld [vmem:[%s1964_s1 + $0x18] sm:$0xff]  ;;  %1394 = vmatprep.mubr.msk.f32.mxu1 %vm225_vm3, %v216_v8  ;;  %v27_v12 = vld [vmem:[%s1964_s1 + $0x20] sm:$0xff]  ;;  %v1629_v18 = vmov 0   ;;  %v31_v22 = vlaneseq  ;;  %vm359_vm4 = vcmask 130048  }
   0x8   :  { %85 = vperm.xlu0 %1546, %v24_v7   ;;  %1395 = vmatmul.mubr.msk.f32.vlgmr.msra.gmra.mrb[0].mxu1 %vm225_vm3, %v217_v9  ;;  %v219_v13 = vld [vmem:[%s1965_s2 + $0x18] sm:$0xff]  ;;  %v220_v14 = vld [vmem:[%s1965_s2 + $0x20] sm:$0xff]  ;;  %v28_v15 = vld [vmem:[%s1964_s1 + $0x28] sm:$0xff]  ;;  %v1630_v25 = vmov 0.0   ;;  %s1633_s0 = smov 112   ;;  %s1634_s28 = smov 16  }
   0x9   :  { %1397 = vmatprep.mubr.msk.f32.mxu1 %vm225_vm3, %v218_v10  ;;  %91 = vperm.xlu1 %1547, %v26_v11   ;;  %v29_v16 = vld [vmem:[%s1964_s1 + $0x30] sm:$0xff]  ;;  %v30_v17 = vld [vmem:[%s1964_s1 + $0x38] sm:$0xff]  ;;  %v221_v19 = vld [vmem:[%s1965_s2 + $0x28] sm:$0xff]  ;;  %v32_v23 = vand.u32 127, %v31_v22  ;;  %s1635_s29 = smov [#allocation2]  }
   0xa   :  { %v222_v20 = vld [vmem:[%s1965_s2 + $0x30] sm:$0xff]  ;;  %v223_v21 = vld [vmem:[%s1965_s2 + $0x38] sm:$0xff]  ;;  %s1632_s2 = smov 127   ;;  %s1258_s30 = sshll.u32 %s1635_s29, 4  ;;  %s1259_s30 = int_to_ptr.vmem [resolvable:$true] %s1258_s30 }
   0xb   :  { %s1604_s6 = scalar_lea.vmem %s1259_s30, 256  ;;  %p1609_p1 = scmp.lt.s32.totalorder %s1259_s30, %s1259_s30 }
   0xc   :  { %94 = vperm.xlu0 %1546, %v27_v12   ;;  %1398 = vmatmul.mubr.msk.f32.gmra.mrb[2].mxu1 %vm225_vm3, %v219_v13  ;;  %p1605_p0 = scmp.ne.s32.totalorder %s1259_s30, %s1604_s6  ;;  %p1610_p2 = scmp.lt.s32.totalorder %s1604_s6, %s1604_s6 }
   0xd   :  { %1400 = vmatprep.mubr.msk.f32.mxu1 %vm225_vm3, %v220_v14  ;;  %97 = vperm.xlu1 %1547, %v28_v15  }
   0xe   :  { %p1611_p3 = por %p1610_p2, %p1609_p1 }
  0x10   :  { %100 = vperm.xlu0 %1546, %v29_v16   ;;  %1401 = vmatmul.mubr.msk.f32.gmra.mrb[4].mxu1 %vm225_vm3, %v221_v19  ;;  %p1612_p4 = pnand %p1611_p3, %p1605_p0 }
  0x11   :  { %103 = vperm.xlu1 %1547, %v30_v17   ;;  %1403 = vmatprep.mubr.msk.f32.mxu1 %vm225_vm3, %v222_v20 }
  0x14   :  { %1548 = vset.pattern.permute.xlu0 %v1629_v18  ;;  %1404 = vmatmul.mubr.msk.f32.gmra.mrb[6].mxu1 %vm225_vm3, %v223_v21 }
  0x15   :  { %34 = vperm.xlu0 %1548, %v23_v3   ;;  %1549 = vset.pattern.permute.xlu1 %v1629_v18 }
  0x16   :  { %37 = vperm.xlu1 %1549, %v24_v7  }
  0x19   :  { %43 = vperm.xlu0 %1548, %v26_v11  }
  0x1a   :  { %40 = vperm.xlu1 %1549, %v25_v5   ;;  %v1631_v5 = vmov 16  }
  0x1d   :  { %49 = vperm.xlu0 %1548, %v28_v15  }
  0x1e   :  { %46 = vperm.xlu1 %1549, %v27_v12  }
  0x21   :  { %55 = vperm.xlu0 %1548, %v30_v17  }
  0x22   :  { %52 = vperm.xlu1 %1549, %v29_v16  }
  0x25   :  { %1550 = vset.pattern.permute.xlu0 %v1631_v5 }
  0x26   :  { %1551 = vset.pattern.permute.xlu1 %v1631_v5 }
  0x81   :  { %v89_v27 = vpop.permute.xlu1 %88 }
  0x82   :  { %vm107_vm6 = vcmp.eq.s32.totalorder %v32_v23, %v89_v27 }
  0x83   :  { %v83_v24 = vpop.permute.xlu0 %82  ;;  %v1745_v28 = vsel %vm107_vm6, 1.0, %v1630_v25 }
  0x84   :  { %vm105_vm5 = vcmp.eq.s32.totalorder %v32_v23, %v83_v24 }
  0x85   :  { %v1741_v26 = vsel %vm105_vm5, 1.0, %v1630_v25 }
  0x86   :  { %1426 = vmatprep.mubr.msk.f32.mxu1 %vm359_vm4, %v1741_v26 }
  0x87   :  { %v86_v29 = vpop.permute.xlu0 %85 }
  0x88   :  { %vm106_vm7 = vcmp.eq.s32.totalorder %v32_v23, %v86_v29  ;;  %v92_v31 = vpop.permute.xlu1 %91 }
  0x89   :  { %v1747_v30 = vsel %vm106_vm7, 1.0, %v1630_v25  ;;  %vm108_vm8 = vcmp.eq.s32.totalorder %v32_v23, %v92_v31 }
  0x8a   :  { %v1749_v32 = vsel %vm108_vm8, 1.0, %v1630_v25 }
  0x8b   :  { %v95_v33 = vpop.permute.xlu0 %94 }
  0x8c   :  { %vm109_vm9 = vcmp.eq.s32.totalorder %v32_v23, %v95_v33  ;;  %v98_v35 = vpop.permute.xlu1 %97 }
  0x8d   :  { %v1751_v34 = vsel %vm109_vm9, 1.0, %v1630_v25  ;;  %vm110_vm10 = vcmp.eq.s32.totalorder %v32_v23, %v98_v35 }
  0x8e   :  { %v1753_v36 = vsel %vm110_vm10, 1.0, %v1630_v25 }
  0x8f   :  { %v101_v37 = vpop.permute.xlu0 %100 }
  0x90   :  { %vm111_vm11 = vcmp.eq.s32.totalorder %v32_v23, %v101_v37  ;;  %v104_v39 = vpop.permute.xlu1 %103 }
  0x91   :  { %v1755_v38 = vsel %vm111_vm11, 1.0, %v1630_v25  ;;  %vm112_vm12 = vcmp.eq.s32.totalorder %v32_v23, %v104_v39 }
  0x92   :  { %v1757_v40 = vsel %vm112_vm12, 1.0, %v1630_v25 }
  0x94   :  { %v35_v41 = vpop.permute.xlu0 %34 }
  0x95   :  { %vm57_vm13 = vcmp.eq.s32.totalorder %v32_v23, %v35_v41  ;;  %v38_v42 = vpop.permute.xlu1 %37 }
  0x96   :  { %v1269_v43 = vsel %vm57_vm13, 1.0, %v1630_v25  ;;  %vm58_vm14 = vcmp.eq.s32.totalorder %v32_v23, %v38_v42 }
  0x97   :  { %1410 = vmatprep.mubr.msk.f32.mxu0 %vm359_vm4, %v1269_v43  ;;  %v1270_v44 = vsel %vm58_vm14, 1.0, %v1630_v25  ;;  %vm691_vm14 = vcmp.gt.f32.partialorder %v1747_v30, 0.5 }
  0x98   :  { %v44_v45 = vpop.permute.xlu0 %43 }
  0x99   :  { %vm60_vm15 = vcmp.eq.s32.totalorder %v32_v23, %v44_v45  ;;  %v41_v46 = vpop.permute.xlu1 %40 }
  0x9a   :  { %v1272_v47 = vsel %vm60_vm15, 1.0, %v1630_v25  ;;  %vm59_vm0 = vcmp.eq.s32.totalorder %v32_v23, %v41_v46  ;;  %vm694_vm15 = vcmp.gt.f32.partialorder %v1751_v34, 0.5 }
  0x9b   :  { %v1271_v48 = vsel %vm59_vm0, 1.0, %v1630_v25  ;;  %vm695_vm0 = vcmp.gt.f32.partialorder %v1753_v36, 0.5 }
  0x9c   :  { %v50_v49 = vpop.permute.xlu0 %49 }
  0x9d   :  { %vm62_vm1 = vcmp.eq.s32.totalorder %v32_v23, %v50_v49  ;;  %v47_v50 = vpop.permute.xlu1 %46 }
  0x9e   :  { %v1274_v51 = vsel %vm62_vm1, 1.0, %v1630_v25  ;;  %vm61_vm2 = vcmp.eq.s32.totalorder %v32_v23, %v47_v50  ;;  %vm696_vm1 = vcmp.gt.f32.partialorder %v1755_v38, 0.5 }
  0x9f   :  { %v1273_v52 = vsel %vm61_vm2, 1.0, %v1630_v25  ;;  %vm690_vm2 = vcmp.gt.f32.partialorder %v1741_v26, 0.5 }
  0xa0   :  { %v56_v53 = vpop.permute.xlu0 %55 }
  0xa1   :  { %vm64_vm3 = vcmp.eq.s32.totalorder %v32_v23, %v56_v53  ;;  %v53_v54 = vpop.permute.xlu1 %52 }
  0xa2   :  { %v1276_v55 = vsel %vm64_vm3, 1.0, %v1630_v25  ;;  %vm63_vm5 = vcmp.eq.s32.totalorder %v32_v23, %v53_v54  ;;  %vm693_vm3 = vcmp.gt.f32.partialorder %v1749_v32, 0.5 }
  0xa3   :  { %v1275_v56 = vsel %vm63_vm5, 1.0, %v1630_v25  ;;  %vm692_vm5 = vcmp.gt.f32.partialorder %v1745_v28, 0.5 }
  0xd7   :  { %v1391_v57 = vpop.f32.mrb[0].mxu0 }
  0xd8   :  { %v207_v58 = vpop.f32.mrb[1].mxu0 }
  0xd9   :  { %v1492_v59 = vpack.c.bf16 %v1391_v57, %v207_v58 }
  0xdb   :  { %1493 = vmatprep.subr.bf16.mxu0 %v1492_v59  ;;  %1497 = vmatprep.subr.bf16.mxu1 %v1492_v59  ;;  %v1396_v60 = vpop.f32.mrb[0].mxu1 }
  0xdc   :  { %1495 = vmatpush3.bf16.msra.mxu0 %v1492_v59  ;;  %1499 = vmatpush3.bf16.msra.mxu1 %v1492_v59  ;;  %v320_v61 = vpop.f32.mrb[1].mxu1 }
  0xdf   :  { %1427 = vmatmul.mubr.msk.f32.vlgmr.msra.gmra.mrb[8].mxu1 %vm359_vm4, %v1747_v30  ;;  %1411 = vmatmul.mubr.msk.f32.vlgmr.msra.gmra.mrb[2].mxu0 %vm359_vm4, %v1270_v44  ;;  %v1399_v62 = vpop.f32.mrb[2].mxu1 }
  0xe0   :  { %1429 = vmatprep.mubr.msk.f32.mxu1 %vm359_vm4, %v1745_v28  ;;  %1413 = vmatprep.mubr.msk.f32.mxu0 %vm359_vm4, %v1271_v48  ;;  %v330_v63 = vpop.f32.mrb[3].mxu1 }
  0xe3   :  { %1430 = vmatmul.mubr.msk.f32.gmra.mrb[10].mxu1 %vm359_vm4, %v1749_v32  ;;  %1414 = vmatmul.mubr.msk.f32.gmra.mrb[4].mxu0 %vm359_vm4, %v1272_v47  ;;  %v1402_v1 = vpop.f32.mrb[4].mxu1 }
  0xe4   :  { %1432 = vmatprep.mubr.msk.f32.mxu1 %vm359_vm4, %v1751_v34  ;;  %1416 = vmatprep.mubr.msk.f32.mxu0 %vm359_vm4, %v1273_v52  ;;  %v340_v2 = vpop.f32.mrb[5].mxu1 }
  0xe7   :  { %1433 = vmatmul.mubr.msk.f32.gmra.mrb[12].mxu1 %vm359_vm4, %v1753_v36  ;;  %1417 = vmatmul.mubr.msk.f32.gmra.mrb[6].mxu0 %vm359_vm4, %v1274_v51  ;;  %v1781_v3 = vpop.f32.mrb[6].mxu1 }
  0xe8   :  { %1435 = vmatprep.mubr.msk.f32.mxu1 %vm359_vm4, %v1755_v38  ;;  %1419 = vmatprep.mubr.msk.f32.mxu0 %vm359_vm4, %v1275_v56  ;;  %v1783_v4 = vpop.f32.mrb[7].mxu1 }
  0xeb   :  { %1436 = vmatmul.mubr.msk.f32.gmra.mrb[14].mxu1 %vm359_vm4, %v1757_v40  ;;  %1420 = vmatmul.mubr.msk.f32.gmra.mrb[8].mxu0 %vm359_vm4, %v1276_v55 }
 0x1b2   :  { %v1428_v6 = vpop.f32.mrb[8].mxu1  ;;  %v1785_v7 = vpop.f32.mrb[2].mxu0 }
 0x1b3   :  { %628 = vrot.lane.b32.xlu0 %v1428_v6, %s1632_s2  ;;  %v579_v8 = vpop.f32.mrb[9].mxu1  ;;  %v1787_v9 = vpop.f32.mrb[3].mxu0 }
 0x1b4   :  { %626 = vrot.lane.b32.xlu1 %v579_v8, %s1632_s2 }
 0x1b6   :  { %v1431_v10 = vpop.f32.mrb[10].mxu1  ;;  %v1789_v11 = vpop.f32.mrb[4].mxu0 }
 0x1b7   :  { %632 = vrot.lane.b32.xlu0 %v1431_v10, %s1632_s2  ;;  %v589_v12 = vpop.f32.mrb[11].mxu1  ;;  %v1791_v13 = vpop.f32.mrb[5].mxu0 }
 0x1b8   :  { %630 = vrot.lane.b32.xlu1 %v589_v12, %s1632_s2 }
 0x1ba   :  { %v1434_v14 = vpop.f32.mrb[12].mxu1  ;;  %v1793_v15 = vpop.f32.mrb[6].mxu0 }
 0x1bb   :  { %636 = vrot.lane.b32.xlu0 %v1434_v14, %s1632_s2  ;;  %v599_v16 = vpop.f32.mrb[13].mxu1  ;;  %v1795_v17 = vpop.f32.mrb[7].mxu0 }
 0x1bc   :  { %634 = vrot.lane.b32.xlu1 %v599_v16, %s1632_s2 }
 0x1be   :  { %v1437_v18 = vpop.f32.mrb[14].mxu1  ;;  %v1797_v19 = vpop.f32.mrb[8].mxu0 }
 0x1bf   :  { %640 = vrot.lane.b32.xlu0 %v1437_v18, %s1632_s2  ;;  %v609_v20 = vpop.f32.mrb[15].mxu1  ;;  %v1799_v21 = vpop.f32.mrb[9].mxu0 }
 0x1c0   :  { %638 = vrot.lane.b32.xlu1 %v609_v20, %s1632_s2 }
 0x225   :  { %v629_v23 = vpop.permute.xlu0 %628 }
 0x226   :  { %v651_v24 = vadd.f32 %v1785_v7, %v629_v23  ;;  %v627_v25 = vpop.permute.xlu1 %626 }
 0x227   :  { %v650_v27 = vadd.f32 %v627_v25, %v1787_v9 }
 0x228   :  { %v659_v29 = vadd.f32 %v1396_v60, %v651_v24 }
 0x229   :  { %v658_v31 = vadd.f32 %v650_v27, %v320_v61  ;;  %v633_v33 = vpop.permute.xlu0 %632 }
 0x22a   :  { %v653_v35 = vadd.f32 %v1789_v11, %v633_v33  ;;  %v631_v37 = vpop.permute.xlu1 %630  ;;  %vm667_vm6 = vcmp.gt.f32.partialorder %v659_v29, 0.0  ;;  %v675_v39 = vmul.f32 0.2, %v659_v29 }
 0x22b   :  { %v652_v41 = vadd.f32 %v631_v37, %v1791_v13  ;;  %vm666_vm7 = vcmp.gt.f32.partialorder %v658_v31, 0.0  ;;  %v674_v42 = vmul.f32 0.2, %v658_v31 }
 0x22c   :  { %v661_v43 = vadd.f32 %v1399_v62, %v653_v35  ;;  %v1805_v44 = vsel %vm667_vm6, %v659_v29, %v675_v39  ;;  %vm697_vm6 = vcmp.gt.f32.partialorder %v1757_v40, 0.5 }
 0x22d   :  { %v660_v45 = vadd.f32 %v652_v41, %v330_v63  ;;  %v637_v46 = vpop.permute.xlu0 %636  ;;  %705 = vperm.xlu0 %1550, %v1805_v44   ;;  %v1808_v47 = vsel %vm666_vm7, %v658_v31, %v674_v42  ;;  %vm887_vm7 = vcmask 523264  }
 0x22e   :  { %v655_v48 = vadd.f32 %v1793_v15, %v637_v46  ;;  %v635_v49 = vpop.permute.xlu1 %634  ;;  %700 = vperm.xlu1 %1551, %v1808_v47   ;;  %vm669_vm8 = vcmp.gt.f32.partialorder %v661_v43, 0.0  ;;  %v677_v50 = vmul.f32 0.2, %v661_v43 }
 0x22f   :  { %v654_v51 = vadd.f32 %v635_v49, %v1795_v17  ;;  %v676_v56 = vmul.f32 0.2, %v660_v45  ;;  %vm668_vm9 = vcmp.gt.f32.partialorder %v660_v45, 0.0 }
 0x230   :  { %v663_v52 = vadd.f32 %v1402_v1, %v655_v48  ;;  %v1813_v53 = vsel %vm669_vm8, %v661_v43, %v677_v50 }
 0x231   :  { %v662_v54 = vadd.f32 %v654_v51, %v340_v2  ;;  %v641_v55 = vpop.permute.xlu0 %640  ;;  %v1820_v63 = vsel %vm668_vm9, %v660_v45, %v676_v56 }
 0x232   :  { %v657_v57 = vadd.f32 %v1797_v19, %v641_v55  ;;  %v639_v58 = vpop.permute.xlu1 %638  ;;  %715 = vperm.xlu1 %1551, %v1813_v53   ;;  %v679_v2 = vmul.f32 0.2, %v663_v52  ;;  %vm671_vm11 = vcmp.gt.f32.partialorder %v663_v52, 0.0 }
 0x233   :  { %v656_v59 = vadd.f32 %v639_v58, %v1799_v21  ;;  %vm670_vm10 = vcmp.gt.f32.partialorder %v662_v54, 0.0  ;;  %v678_v60 = vmul.f32 0.2, %v662_v54 }
 0x234   :  { %v665_v61 = vadd.f32 %v1781_v3, %v657_v57  ;;  %v1826_v6 = vsel %vm671_vm11, %v663_v52, %v679_v2 }
 0x235   :  { %v664_v62 = vadd.f32 %v656_v59, %v1783_v4  ;;  %v1822_v1 = vsel %vm670_vm10, %v662_v54, %v678_v60 }
 0x236   :  { %710 = vperm.xlu1 %1551, %v1820_v63   ;;  %720 = vperm.xlu0 %1550, %v1822_v1   ;;  %v681_v10 = vmul.f32 0.2, %v665_v61  ;;  %vm673_vm13 = vcmp.gt.f32.partialorder %v665_v61, 0.0 }
 0x237   :  { %vm672_vm12 = vcmp.gt.f32.partialorder %v664_v62, 0.0  ;;  %v680_v5 = vmul.f32 0.2, %v664_v62 }
 0x238   :  { %v1832_v3 = vsel %vm673_vm13, %v665_v61, %v681_v10 }
 0x239   :  { %v1828_v8 = vsel %vm672_vm12, %v664_v62, %v680_v5 }
 0x23a   :  { %725 = vperm.xlu1 %1551, %v1826_v6   ;;  %730 = vperm.xlu0 %1550, %v1828_v8  }
 0x23e   :  { %735 = vperm.xlu1 %1551, %v1832_v3  }
 0x2ac   :  { %v706_v12 = vpop.permute.xlu0 %705 }
 0x2ad   :  { %v701_v4 = vpop.permute.xlu1 %700  ;;  %v739_v20 = vsel %vm691_vm14, %v706_v12, -1e+09 }
 0x2ae   :  { %v738_v33 = vsel %vm690_vm2, %v701_v4, -1e+09  ;;  %v747_v39 = vsel %vm359_vm4, %v739_v20, -inf }
 0x2af   :  { %v746_v48 = vsel %vm359_vm4, %v738_v33, -inf }
 0x2b1   :  { %v716_v14 = vpop.permute.xlu1 %715 }
 0x2b2   :  { %v741_v35 = vsel %vm693_vm3, %v716_v14, -1e+09 }
 0x2b3   :  { %v749_v49 = vsel %vm359_vm4, %v741_v35, -inf }
 0x2b5   :  { %v711_v16 = vpop.permute.xlu1 %710  ;;  %v721_v18 = vpop.permute.xlu0 %720 }
 0x2b6   :  { %v742_v25 = vsel %vm694_vm15, %v721_v18, -1e+09  ;;  %v740_v37 = vsel %vm692_vm5, %v711_v16, -1e+09 }
 0x2b7   :  { %v750_v41 = vsel %vm359_vm4, %v742_v25, -inf  ;;  %v748_v50 = vsel %vm359_vm4, %v740_v37, -inf }
 0x2b8   :  { %v751_v52 = vmax.f32 %v746_v48, %v750_v41 }
 0x2b9   :  { %v726_v23 = vpop.permute.xlu1 %725  ;;  %v731_v24 = vpop.permute.xlu0 %730 }
 0x2ba   :  { %v743_v27 = vsel %vm695_vm0, %v726_v23, -1e+09  ;;  %v744_v29 = vsel %vm696_vm1, %v731_v24, -1e+09 }
 0x2bb   :  { %v752_v31 = vsel %vm359_vm4, %v743_v27, -inf  ;;  %v754_v42 = vsel %vm359_vm4, %v744_v29, -inf }
 0x2bc   :  { %v753_v45 = vmax.f32 %v747_v39, %v752_v31  ;;  %v755_v54 = vmax.f32 %v748_v50, %v754_v42 }
 0x2bd   :  { %v736_v43 = vpop.permute.xlu1 %735 }
 0x2be   :  { %v745_v46 = vsel %vm697_vm6, %v736_v43, -1e+09  ;;  %v758_v56 = vmax.f32 %v751_v52, %v753_v45 }
 0x2bf   :  { %v756_v51 = vsel %vm359_vm4, %v745_v46, -inf }
 0x2c0   :  { %v757_v55 = vmax.f32 %v749_v49, %v756_v51 }
 0x2c2   :  { %v759_v57 = vmax.f32 %v755_v54, %v757_v55 }
 0x2c4   :  { %v760_v58 = vmax.f32 %v758_v56, %v759_v57 }
 0x2c6   :  { %v761_v59 = vrot.slane %v760_v58, 4 }
 0x2c8   :  { %v762_v60 = vmax.f32 %v760_v58, %v761_v59 }
 0x2ca   :  { %v763_v61 = vrot.slane %v762_v60, 2 }
 0x2cc   :  { %v764_v62 = vmax.f32 %v762_v60, %v763_v61 }
 0x2ce   :  { %v765_v2 = vrot.slane %v764_v62, 1 }
 0x2d0   :  { %v766_v5 = vmax.f32 %v764_v62, %v765_v2 }
 0x2d2   :  { %v768_v10 = vmul.f32 %v1747_v30, %v766_v5  ;;  %v767_v4 = vmul.f32 %v1741_v26, %v766_v5  ;;  %v771_v16 = vmul.f32 %v1751_v34, %v766_v5  ;;  %v769_v18 = vmul.f32 %v1745_v28, %v766_v5 }
 0x2d3   :  { %v773_v24 = vmul.f32 %v1755_v38, %v766_v5  ;;  %v770_v25 = vmul.f32 %v1749_v32, %v766_v5  ;;  %v772_v31 = vmul.f32 %v1753_v36, %v766_v5  ;;  %v774_v35 = vmul.f32 %v1757_v40, %v766_v5 }
 0x2d4   :  { %v778_v12 = vsel %vm359_vm4, %v768_v10, 0.0  ;;  %v775_v14 = vsel %vm359_vm4, %v767_v4, 0.0  ;;  %v787_v20 = vsel %vm359_vm4, %v771_v16, 0.0  ;;  %v781_v23 = vsel %vm359_vm4, %v769_v18, 0.0 }
 0x2d5   :  { %779 = vadd.xlane.f32.xlu1 %v778_v12  ;;  %776 = vadd.xlane.f32.xlu0 %v775_v14  ;;  %v793_v27 = vsel %vm359_vm4, %v773_v24, 0.0  ;;  %v784_v29 = vsel %vm359_vm4, %v770_v25, 0.0  ;;  %v790_v33 = vsel %vm359_vm4, %v772_v31, 0.0  ;;  %v796_v37 = vsel %vm359_vm4, %v774_v35, 0.0 }
 0x2d9   :  { %788 = vadd.xlane.f32.xlu1 %v787_v20  ;;  %782 = vadd.xlane.f32.xlu0 %v781_v23 }
 0x2dd   :  { %794 = vadd.xlane.f32.xlu1 %v793_v27  ;;  %785 = vadd.xlane.f32.xlu0 %v784_v29 }
 0x2e1   :  { %791 = vadd.xlane.f32.xlu0 %v790_v33 }
 0x2e5   :  { %797 = vadd.xlane.f32.xlu0 %v796_v37 }
 0x362   :  { %v780_v39 = vpop.xlane.xlu1 %779  ;;  %v777_v41 = vpop.xlane.xlu0 %776 }
 0x363   :  { %v800_v42 = vsub.f32 %v1805_v44, %v780_v39  ;;  %v799_v43 = vsub.f32 %v1808_v47, %v777_v41 }
 0x365   :  { %v809_v45 = vmul.f32 1.442695, %v800_v42  ;;  %v807_v46 = vmul.f32 1.442695, %v799_v43 }
 0x366   :  { %v789_v48 = vpop.xlane.xlu1 %788  ;;  %v783_v49 = vpop.xlane.xlu0 %782 }
 0x367   :  { %1572 = vpow2.f32 %v809_v45  ;;  %v801_v50 = vsub.f32 %v1820_v63, %v783_v49  ;;  %v803_v51 = vsub.f32 %v1822_v1, %v789_v48 }
 0x368   :  { %1574 = vpow2.f32 %v807_v46 }
 0x369   :  { %v811_v54 = vmul.f32 1.442695, %v801_v50  ;;  %v815_v58 = vmul.f32 1.442695, %v803_v51 }
 0x36a   :  { %v786_v52 = vpop.xlane.xlu0 %785  ;;  %v795_v55 = vpop.xlane.xlu1 %794 }
 0x36b   :  { %v802_v56 = vsub.f32 %v1813_v53, %v786_v52  ;;  %v805_v44 = vsub.f32 %v1828_v8, %v795_v55  ;;  %1576 = vpow2.f32 %v811_v54 }
 0x36d   :  { %v813_v57 = vmul.f32 1.442695, %v802_v56  ;;  %v819_v1 = vmul.f32 1.442695, %v805_v44 }
 0x36e   :  { %v792_v47 = vpop.xlane.xlu0 %791 }
 0x36f   :  { %v804_v59 = vsub.f32 %v1826_v6, %v792_v47  ;;  %1578 = vpow2.f32 %v813_v57 }
 0x370   :  { %1580 = vpow2.f32 %v815_v58 }
 0x371   :  { %v1874_v60 = vpop.eup %1572  ;;  %v817_v63 = vmul.f32 1.442695, %v804_v59 }
 0x372   :  { %v1876_v61 = vpop.eup %1574  ;;  %v798_v62 = vpop.xlane.xlu0 %797 }
 0x373   :  { %1582 = vpow2.f32 %v817_v63  ;;  %v806_v53 = vsub.f32 %v1832_v3, %v798_v62  ;;  %v1552_v2 = vpack.i.bf16 %v1874_v60, %v1876_v61 }
 0x374   :  { %1584 = vpow2.f32 %v819_v1 }
 0x375   :  { %v821_v8 = vmul.f32 1.442695, %v806_v53  ;;  %1553 = vrot.lane.b32.xlu1 %v1552_v2, %s1633_s0  ;;  %v1881_v6 = vpop.eup %1576 }
 0x377   :  { %1586 = vpow2.f32 %v821_v8 }
 0x379   :  { %v1883_v5 = vpop.eup %1578 }
 0x37a   :  { %v1557_v10 = vpack.i.bf16 %v1883_v5, %v1881_v6  ;;  %v1887_v4 = vpop.eup %1580 }
 0x37c   :  { %1558 = vrot.lane.b32.xlu0 %v1557_v10, %s1633_s0 }
 0x37d   :  { %v1889_v12 = vpop.eup %1582 }
 0x37e   :  { %v1562_v3 = vpack.i.bf16 %v1889_v12, %v1887_v4  ;;  %v1893_v14 = vpop.eup %1584 }
 0x380   :  { %1563 = vrot.lane.b32.xlu1 %v1562_v3, %s1633_s0 }
 0x381   :  { %v1895_v16 = vpop.eup %1586 }
 0x382   :  { %v1567_v18 = vpack.i.bf16 %v1895_v16, %v1893_v14 }
 0x384   :  { %1568 = vrot.lane.b32.xlu1 %v1567_v18, %s1633_s0 }
 0x39a   :  { %823 = vxpose.xlu0.b32.start [1/8] (short) (narrow) %v1741_v26, 16 }
 0x39e   :  { %824 = vxpose.xlu0.b32.cont [2/8] (short) (narrow) %v1747_v30, 16 }
 0x3a2   :  { %825 = vxpose.xlu0.b32.cont [3/8] (short) (narrow) %v1745_v28, 16 }
 0x3a6   :  { %826 = vxpose.xlu0.b32.cont [4/8] (short) (narrow) %v1749_v32, 16 }
 0x3aa   :  { %827 = vxpose.xlu0.b32.cont [5/8] (short) (narrow) %v1751_v34, 16 }
 0x3ae   :  { %828 = vxpose.xlu0.b32.cont [6/8] (short) (narrow) %v1753_v36, 16 }
 0x3b2   :  { %829 = vxpose.xlu0.b32.cont [7/8] (short) (narrow) %v1755_v38, 16 }
 0x3b6   :  { %830 = vxpose.xlu0.b32.end [8/8] (short) (narrow) %v1757_v40, 16 }
 0x3e7   :  { %v1554_v20 = vpop.permute.xlu1 %1553 }
 0x3e8   :  { %v1556_v23 = vunpack.i.h.bf16 %v1554_v20  ;;  %v1555_v24 = vunpack.i.l.bf16 %v1554_v20 }
 0x3ea   :  { %v1500_v25 = vpack.c.bf16 %v1556_v23, %v1555_v24 }
 0x3ec   :  { %1501 = vmatprep.subr.bf16.mxu0 %v1500_v25 }
 0x3ed   :  { %1503 = vmatpush3.bf16.msra.mxu0 %v1500_v25 }
 0x3ee   :  { %v1559_v27 = vpop.permute.xlu0 %1558 }
 0x3ef   :  { %v1561_v29 = vunpack.i.h.bf16 %v1559_v27  ;;  %v1560_v31 = vunpack.i.l.bf16 %v1559_v27 }
 0x3f1   :  { %v1504_v33 = vpack.c.bf16 %v1561_v29, %v1560_v31 }
 0x3f2   :  { %v1564_v35 = vpop.permute.xlu1 %1563 }
 0x3f3   :  { %v1566_v37 = vunpack.i.h.bf16 %v1564_v35  ;;  %v1565_v39 = vunpack.i.l.bf16 %v1564_v35  ;;  %1505 = vmatprep.subr.bf16.mxu0 %v1504_v33 }
 0x3f4   :  { %1507 = vmatpush3.bf16.msra.mxu0 %v1504_v33 }
 0x3f5   :  { %v1508_v41 = vpack.c.bf16 %v1566_v37, %v1565_v39 }
 0x3f6   :  { %v1569_v42 = vpop.permute.xlu1 %1568 }
 0x3f7   :  { %v1571_v43 = vunpack.i.h.bf16 %v1569_v42  ;;  %v1570_v45 = vunpack.i.l.bf16 %v1569_v42  ;;  %1509 = vmatprep.subr.bf16.mxu0 %v1508_v41 }
 0x3f8   :  { %1511 = vmatpush3.bf16.msra.mxu0 %v1508_v41 }
 0x3f9   :  { %v1512_v46 = vpack.c.bf16 %v1571_v43, %v1570_v45 }
 0x3fb   :  { %1513 = vmatprep.subr.bf16.mxu0 %v1512_v46 }
 0x3fc   :  { %1515 = vmatpush3.bf16.msra.mxu0 %v1512_v46 }
 0x41a   :  { %v839_v48 = vpop.trf.xlu0 }
 0x41b   :  { %1454 = vmatprep.mubr.msk.f32.mxu0 %vm887_vm7, %v839_v48  ;;  %1489 = vmatprep.mubr.msk.f32.mxu1 %vm887_vm7, %v839_v48 }
 0x41e   :  { %v1909_v49 = vpop.trf.xlu0 }
 0x41f   :  { %1455 = vmatmul.mubr.msk.f32.vlgmr.msra.gmra.mrb[10].mxu0 %vm887_vm7, %v1909_v49 }
 0x420   :  { %1461 = vmatprep.mubr.msk.f32.mxu0 %vm359_vm4, %v1741_v26 }
 0x4f2   :  { %v1456_v50 = vpop.f32.mrb[10].mxu0 }
 0x4f3   :  { %v960_v51 = vpop.f32.mrb[11].mxu0 }
 0x4f4   :  { %v1516_v52 = vpack.c.bf16 %v1456_v50, %v960_v51 }
 0x4f6   :  { %1517 = vmatprep.subr.bf16.mxu0 %v1516_v52 }
 0x4f7   :  { %1519 = vmatpush3.bf16.msra.mxu0 %v1516_v52 }
 0x4fa   :  { %1462 = vmatmul.mubr.msk.f32.vlgmr.msra.gmra.mrb[12].mxu0 %vm359_vm4, %v1747_v30 }
 0x4fb   :  { %1464 = vmatprep.mubr.msk.f32.mxu0 %vm359_vm4, %v1745_v28 }
 0x4fe   :  { %1465 = vmatmul.mubr.msk.f32.gmra.mrb[14].mxu0 %vm359_vm4, %v1749_v32 }
 0x4ff   :  { %1467 = vmatprep.mubr.msk.f32.mxu0 %vm359_vm4, %v1751_v34 }
 0x502   :  { %1468 = vmatmul.mubr.msk.f32.gmra.mrb[16].mxu0 %vm359_vm4, %v1753_v36 }
 0x503   :  { %1470 = vmatprep.mubr.msk.f32.mxu0 %vm359_vm4, %v1755_v38 }
 0x506   :  { %1471 = vmatmul.mubr.msk.f32.gmra.mrb[18].mxu0 %vm359_vm4, %v1757_v40 }
 0x5cd   :  { %v1463_v26 = vpop.f32.mrb[12].mxu0 }
 0x5ce   :  { %v1041_v30 = vadd.f32 1e-16, %v1463_v26  ;;  %v1035_v54 = vpop.f32.mrb[13].mxu0 }
 0x5cf   :  { %v1036_v28 = vadd.f32 1e-16, %v1035_v54 }
 0x5d0   :  { %1588 = vrcp.f32 %v1041_v30 }
 0x5d1   :  { %v1466_v55 = vpop.f32.mrb[14].mxu0  ;;  %1590 = vrcp.f32 %v1036_v28 }
 0x5d2   :  { %v1045_v56 = vpop.f32.mrb[15].mxu0  ;;  %v1051_v32 = vadd.f32 1e-16, %v1466_v55 }
 0x5d3   :  { %v1046_v58 = vadd.f32 1e-16, %v1045_v56 }
 0x5d4   :  { %1592 = vrcp.f32 %v1051_v32 }
 0x5d5   :  { %v1469_v57 = vpop.f32.mrb[16].mxu0  ;;  %1594 = vrcp.f32 %v1046_v58 }
 0x5d6   :  { %v1055_v34 = vpop.f32.mrb[17].mxu0  ;;  %v1061_v38 = vadd.f32 1e-16, %v1469_v57 }
 0x5d7   :  { %v1056_v59 = vadd.f32 1e-16, %v1055_v34 }
 0x5d8   :  { %1596 = vrcp.f32 %v1061_v38 }
 0x5d9   :  { %v1472_v36 = vpop.f32.mrb[18].mxu0  ;;  %1598 = vrcp.f32 %v1056_v59 }
 0x5da   :  { %v1589_v44 = vpop.eup %1588  ;;  %v1065_v47 = vpop.f32.mrb[19].mxu0  ;;  %v1071_v53 = vadd.f32 1e-16, %v1472_v36 }
 0x5db   :  { %1092 = vrot.lane.b32.xlu1 %v1589_v44, %s1634_s28  ;;  %v1591_v40 = vpop.eup %1590  ;;  %v1066_v1 = vadd.f32 1e-16, %v1065_v47 }
 0x5dd   :  { %1600 = vrcp.f32 %v1066_v1 }
 0x5de   :  { %v1593_v63 = vpop.eup %1592  ;;  %1602 = vrcp.f32 %v1071_v53 }
 0x5df   :  { %1090 = vrot.lane.b32.xlu1 %v1591_v40, %s1634_s28  ;;  %v1595_v62 = vpop.eup %1594 }
 0x5e2   :  { %v1597_v2 = vpop.eup %1596 }
 0x5e3   :  { %1096 = vrot.lane.b32.xlu1 %v1593_v63, %s1634_s28  ;;  %v1599_v8 = vpop.eup %1598 }
 0x5e7   :  { %1094 = vrot.lane.b32.xlu1 %v1595_v62, %s1634_s28  ;;  %v1601_v10 = vpop.eup %1600 }
 0x5e8   :  { %v1603_v3 = vpop.eup %1602 }
 0x5eb   :  { %1100 = vrot.lane.b32.xlu1 %v1597_v2, %s1634_s28 }
 0x5ef   :  { %1098 = vrot.lane.b32.xlu1 %v1599_v8, %s1634_s28 }
 0x5f3   :  { %1102 = vrot.lane.b32.xlu1 %v1601_v10, %s1634_s28 }
 0x5f7   :  { %1104 = vrot.lane.b32.xlu1 %v1603_v3, %s1634_s28 }
 0x64d   :  { %v1093_v18 = vpop.permute.xlu1 %1092 }
 0x64e   :  { %v1115_v20 = vmul.f32 %v1874_v60, %v1093_v18 }
 0x650   :  { %1129 = vperm.xlu1 %1551, %v1115_v20  }
 0x651   :  { %v1091_v23 = vpop.permute.xlu1 %1090 }
 0x652   :  { %v1114_v24 = vmul.f32 %v1876_v61, %v1091_v23 }
 0x654   :  { %1124 = vperm.xlu1 %1551, %v1114_v24  }
 0x655   :  { %v1097_v25 = vpop.permute.xlu1 %1096 }
 0x656   :  { %v1117_v27 = vmul.f32 %v1883_v5, %v1097_v25 }
 0x658   :  { %1139 = vperm.xlu1 %1551, %v1117_v27  }
 0x659   :  { %v1095_v29 = vpop.permute.xlu1 %1094 }
 0x65a   :  { %v1116_v31 = vmul.f32 %v1881_v6, %v1095_v29 }
 0x65c   :  { %1134 = vperm.xlu1 %1551, %v1116_v31  }
 0x65d   :  { %v1101_v33 = vpop.permute.xlu1 %1100 }
 0x65e   :  { %v1119_v35 = vmul.f32 %v1889_v12, %v1101_v33 }
 0x660   :  { %1149 = vperm.xlu1 %1551, %v1119_v35  }
 0x661   :  { %v1099_v37 = vpop.permute.xlu1 %1098 }
 0x662   :  { %v1118_v60 = vmul.f32 %v1887_v4, %v1099_v37 }
 0x664   :  { %1144 = vperm.xlu1 %1551, %v1118_v60  }
 0x665   :  { %v1103_v39 = vpop.permute.xlu1 %1102 }
 0x666   :  { %v1120_v61 = vmul.f32 %v1893_v14, %v1103_v39 }
 0x668   :  { %1154 = vperm.xlu1 %1551, %v1120_v61  }
 0x669   :  { %v1105_v41 = vpop.permute.xlu1 %1104 }
 0x66a   :  { %v1121_v5 = vmul.f32 %v1895_v16, %v1105_v41 }
 0x66c   :  { %1159 = vperm.xlu0 %1550, %v1121_v5  }
 0x6cf   :  { %v1130_v42 = vpop.permute.xlu1 %1129 }
 0x6d0   :  { %v1163_v6 = vmul.f32 %v1785_v7, %v1130_v42 }
 0x6d3   :  { %v1125_v43 = vpop.permute.xlu1 %1124 }
 0x6d4   :  { %v1162_v45 = vmul.f32 %v1125_v43, %v1787_v9 }
 0x6d6   :  { %v1520_v12 = vpack.c.bf16 %v1163_v6, %v1162_v45 }
 0x6d7   :  { %v1140_v46 = vpop.permute.xlu1 %1139 }
 0x6d8   :  { %1521 = vmatprep.subr.bf16.mxu1 %v1520_v12  ;;  %v1165_v48 = vmul.f32 %v1789_v11, %v1140_v46 }
 0x6d9   :  { %1523 = vmatpush3.bf16.msra.mxu1 %v1520_v12 }
 0x6db   :  { %v1135_v4 = vpop.permute.xlu1 %1134 }
 0x6dc   :  { %v1164_v14 = vmul.f32 %v1135_v4, %v1791_v13  ;;  %v1171_v13 = vshrl.u32 %v31_v22, 7 }
 0x6de   :  { %v1524_v50 = vpack.c.bf16 %v1165_v48, %v1164_v14 }
 0x6df   :  { %v1150_v51 = vpop.permute.xlu1 %1149 }
 0x6e0   :  { %1525 = vmatprep.subr.bf16.mxu1 %v1524_v50  ;;  %v1167_v52 = vmul.f32 %v1793_v15, %v1150_v51  ;;  %v1172_v15 = vsub.s32 5, %v1171_v13 }
 0x6e1   :  { %1527 = vmatpush3.bf16.msra.mxu1 %v1524_v50 }
 0x6e3   :  { %v1145_v16 = vpop.permute.xlu1 %1144 }
 0x6e4   :  { %v1166_v7 = vmul.f32 %v1145_v16, %v1795_v17  ;;  %v1173_v17 = vrot.slane %v1671_v0, %v1172_v15 }
 0x6e6   :  { %v1528_v26 = vpack.c.bf16 %v1167_v52, %v1166_v7 }
 0x6e7   :  { %v1155_v9 = vpop.permute.xlu1 %1154 }
 0x6e8   :  { %1529 = vmatprep.subr.bf16.mxu1 %v1528_v26  ;;  %v1168_v54 = vmul.f32 %v1155_v9, %v1799_v21 }
 0x6e9   :  { %1531 = vmatpush3.bf16.msra.mxu1 %v1528_v26 }
 0x6eb   :  { %v1160_v30 = vpop.permute.xlu0 %1159 }
 0x6ec   :  { %v1169_v11 = vmul.f32 %v1797_v19, %v1160_v30 }
 0x6ee   :  { %v1532_v28 = vpack.c.bf16 %v1169_v11, %v1168_v54 }
 0x6f0   :  { %1533 = vmatprep.subr.bf16.mxu1 %v1532_v28 }
 0x6f1   :  { %1535 = vmatpush3.bf16.msra.mxu1 %v1532_v28 }
 0x6f4   :  { %1490 = vmatmul.mubr.msk.f32.vlgmr.msra.gmra.mrb[16].mxu1 %vm887_vm7, %v1909_v49 }
 0x7c7   :  { %v1491_v55 = vpop.f32.mrb[16].mxu1 }
 0x7c8   :  { %v1246_v56 = vadd.f32 %v1491_v55, %v1173_v17  ;;  %v1240_v32 = vpop.f32.mrb[17].mxu1 }
 0x7c9   :  { %v1241_v57 = vadd.f32 %v1240_v32, %v1173_v17 }
 0x7ca   :  { %v1250_v21 = vmax.f32 %v1246_v56, 0.0 }
 0x7cb   :  { %v1249_v19 = vmax.f32 %v1241_v57, 0.0 }
 0x7cc   :  { %1252 = vst.msk [vmem:[#allocation2 + $0x8] sm:$0xff] %vm359_vm4, %v1250_v21 }
 0x7cd   :  { %1251 = vst.msk [vmem:[#allocation2] sm:$0xff] %vm359_vm4, %v1249_v19 }
 0x7ce   :  { %1615 = shalt.err (!%p1612_p4)
}
 0x7cf   :  { %s1616_s9 = scalar_lea.hbm %s1968_s5, 256 }
 0x7d0   :  { %p1617_p5 = scmp.ne.s32.totalorder %s1968_s5, %s1616_s9  ;;  %p1620_p6 = scmp.lt.u32.totalorder %s1616_s9, %s1968_s5 }
 0x7d2   :  { %p1622_p7 = pnand %p1620_p6, %p1617_p5 }
 0x7d4   :  { %1625 = shalt.err (!%p1622_p7)
}
 0x7d5   :  { %s1636_s13 = smov 128   ;;  %s1637_s14 = smov 8  }
 0x7d6   :  { %1264 = dma.vmem_to_hbm [thread:$0]  %s1259_s30, 256, %s1968_s5, [#allocation3], %s1636_s13, %s1636_s13, %s1637_s14  }
 0x7d7   :  { %1626 = dma.done.wait [#allocation3], 256  }
 0x7d8   :  { %1627 = vsyncadd [#allocation3], 4294967040 }
 0x7d9   :  { %1268 = vsyncpa [#allocation3], 1 }

</bundles_post_ra>
